<compile_context>
chip_gen: v5e
topology: v5e:2x2
jax: 0.10.0
libtpu: 0.0.40
codegen_flags: <defaults>
</compile_context>

<pallas_src>
import functools

import jax
import jax.numpy as jnp
from jax.experimental import pallas as pl
from jax.experimental.pallas import tpu as pltpu


# ---------------------------------------------------------------------------
# Fused Pallas kernel
# ---------------------------------------------------------------------------
def _fused_inverted_residual_kernel(*refs, Cin, hidden, W, SH, WIN,
                                    has_expand, identity):
    if has_expand:
        (x_ref, we_ref, s1_ref, b1_ref, wd_ref, s2_ref, b2_ref,
         wp_ref, s3_ref, b3_ref, o_ref, h_scr) = refs
    else:
        (x_ref, wd_ref, s2_ref, b2_ref,
         wp_ref, s3_ref, b3_ref, o_ref, h_scr) = refs

    SHW = SH * W
    i = pl.program_id(1)
    start = pl.multiple_of(i * SHW, 128)

    # Halo'd input window for this row strip: (Cin, (SH+2)*W + 2).
    xw = x_ref[:, pl.ds(start, WIN)].astype(jnp.float32)

    # ---- 1x1 expand + BN1 + ReLU6 (VPU broadcast-FMAs; K = Cin is tiny) ----
    if has_expand:
        h = jnp.zeros((hidden, WIN), jnp.float32)
        for c in range(Cin):
            h = h + we_ref[:, c:c + 1].astype(jnp.float32) * xw[c:c + 1, :]
        h = jnp.clip(h * s1_ref[...] + b1_ref[...], 0.0, 6.0)
    else:
        h = xw

    # Re-zero halo lanes that fall outside the image so the depthwise conv
    # sees true zero padding (matches nn.Conv2d(..., padding=1) semantics).
    lane = jax.lax.broadcasted_iota(jnp.int32, (1, WIN), 1)
    first = i == 0
    last = i == pl.num_programs(1) - 1
    outside = jnp.logical_or(
        jnp.logical_and(first, lane < W + 1),
        jnp.logical_and(last, lane >= (SH + 1) * W + 1))
    h_scr[...] = jnp.where(outside, 0.0, h)

    # ---- depthwise 3x3 (stride 1) + BN2 + ReLU6 ----
    col = jax.lax.broadcasted_iota(jnp.int32, (1, SHW), 1) % W
    not_left = col != 0
    not_right = col != (W - 1)
    acc = jnp.zeros((hidden, SHW), jnp.float32)
    for dh in range(3):
        for dw in range(3):
            tap = h_scr[:, dh * W + dw: dh * W + dw + SHW]
            if dw == 0:
                tap = jnp.where(not_left, tap, 0.0)
            elif dw == 2:
                tap = jnp.where(not_right, tap, 0.0)
            k = dh * 3 + dw
            acc = acc + wd_ref[:, k:k + 1].astype(jnp.float32) * tap
    a = jnp.clip(acc * s2_ref[...] + b2_ref[...], 0.0, 6.0)

    # ---- 1x1 project + BN3 (+ residual) ----
    y = jnp.dot(wp_ref[...].astype(jnp.float32), a,
                preferred_element_type=jnp.float32)
    y = y * s3_ref[...] + b3_ref[...]
    if identity:
        y = y + xw[:, W + 1: W + 1 + SHW]
    o_ref[...] = y.astype(o_ref.dtype)


# ---------------------------------------------------------------------------
# pallas_call wrapper (NCHW in, NCHW out — no layout transposes)
# ---------------------------------------------------------------------------
def _choose_strip_height(H, W):
    """Smallest SH with H % SH == 0 and (SH*W) % 128 == 0 (lane-dense strips)."""
    for sh in range(1, H + 1):
        if H % sh == 0 and (sh * W) % 128 == 0:
            return sh
    return None


def inverted_residual_forward(params, x_nchw, *, inp, oup, stride):
    assert stride in (1, 2)
    # TODO(synk): stride==2 depthwise (strided lane subsampling) not wired into
    # the fused kernel; this script exercises the stride==1 branch.
    assert stride == 1, "only stride=1 implemented in the fused Pallas kernel"
    identity = (stride == 1 and inp == oup)

    N, C, H, W = x_nchw.shape
    assert C == inp
    hidden = params["hidden"]
    has_expand = params["expand_ratio"] != 1
    if not has_expand:
        assert hidden == C

    SH = _choose_strip_height(H, W)
    assert SH is not None, "need a strip height SH | H with SH*W % 128 == 0"
    SHW = SH * W
    WIN = (SH + 2) * W + 2        # halo'd, flattened strip window (+2 corners)
    n_strips = H // SH
    L = H * W + 2 * (W + 1)       # flat spatial axis, zero-padded

    # Zero-pad the flattened spatial axis by (W+1) on each side == one zero
    # row above/below plus one corner lane.  This pads the small Cin input
    # once; the hidden tensor is never padded or written to HBM.
    xf = jnp.pad(x_nchw.reshape(N, C, H * W), ((0, 0), (0, 0), (W + 1, W + 1)))

    col = lambda v: v.reshape(-1, 1).astype(jnp.float32)

    def const_spec(shape):
        return pl.BlockSpec(shape, lambda n, i: (0, 0))

    args = [xf]
    in_specs = [pl.BlockSpec((None, C, L), lambda n, i: (n, 0, 0))]
    if has_expand:
        s1, b1 = params["bn1"]
        args += [params["w_expand"].T, col(s1), col(b1)]        # (hidden, Cin)
        in_specs += [const_spec((hidden, C)),
                     const_spec((hidden, 1)), const_spec((hidden, 1))]
    s2, b2 = params["bn2"]
    s3, b3 = params["bn3"]
    args += [params["w_dw"].T, col(s2), col(b2),                # (hidden, 9)
             params["w_proj"].T, col(s3), col(b3)]              # (oup, hidden)
    in_specs += [const_spec((hidden, 9)),
                 const_spec((hidden, 1)), const_spec((hidden, 1)),
                 const_spec((oup, hidden)),
                 const_spec((oup, 1)), const_spec((oup, 1))]

    kernel = functools.partial(
        _fused_inverted_residual_kernel,
        Cin=C, hidden=hidden, W=W, SH=SH, WIN=WIN,
        has_expand=has_expand, identity=identity)

    out_flat = pl.pallas_call(
        kernel,
        out_shape=jax.ShapeDtypeStruct((N, oup, H * W), x_nchw.dtype),
        grid_spec=pltpu.PrefetchScalarGridSpec(
            num_scalar_prefetch=0,
            grid=(N, n_strips),
            in_specs=in_specs,
            out_specs=pl.BlockSpec((None, oup, SHW), lambda n, i: (n, 0, i)),
            scratch_shapes=[pltpu.VMEM((hidden, WIN), jnp.float32)]),
        compiler_params=pltpu.CompilerParams(
            dimension_semantics=("parallel", "parallel"),
            vmem_limit_bytes=32 * 1024 * 1024),
    )(*args)
    return out_flat.reshape(N, oup, H, W)


# ---------------------------------------------------------------------------
# Params (BN folded to inference scale/bias) + pure-JAX reference
# ---------------------------------------------------------------------------
def fold_bn(gamma, beta, mean, var, eps=1e-5):
    scale = gamma / jnp.sqrt(var + eps)
    bias = beta - mean * scale
    return scale.astype(jnp.float32), bias.astype(jnp.float32)


def init_inverted_residual_params(key, inp, oup, expand_ratio):
    hidden = int(round(inp * expand_ratio))
    ks = jax.random.split(key, 16)

    def bn_params(k, c):
        k1, k2, k3, k4 = jax.random.split(k, 4)
        gamma = jax.random.uniform(k1, (c,), jnp.float32, 0.5, 1.5)
        beta = 0.1 * jax.random.normal(k2, (c,), jnp.float32)
        mean = 0.1 * jax.random.normal(k3, (c,), jnp.float32)
        var = jax.random.uniform(k4, (c,), jnp.float32, 0.5, 1.5)
        return fold_bn(gamma, beta, mean, var)

    params = {"expand_ratio": expand_ratio, "hidden": hidden}
    if expand_ratio != 1:
        # 1x1 expand: torch weight (hidden, inp, 1, 1) -> (inp, hidden)
        params["w_expand"] = 0.1 * jax.random.normal(ks[0], (inp, hidden), jnp.float32)
        params["bn1"] = bn_params(ks[1], hidden)
    # depthwise 3x3: torch weight (hidden, 1, 3, 3) -> (9, hidden)
    params["w_dw"] = 0.1 * jax.random.normal(ks[2], (9, hidden), jnp.float32)
    params["bn2"] = bn_params(ks[3], hidden)
    # 1x1 project: torch weight (oup, hidden, 1, 1) -> (hidden, oup)
    params["w_proj"] = 0.1 * jax.random.normal(ks[4], (hidden, oup), jnp.float32)
    params["bn3"] = bn_params(ks[5], oup)
    return params


def reference_forward(params, x_nchw, *, inp, oup, stride):
    identity = (stride == 1 and inp == oup)
    hidden = params["hidden"]
    x = x_nchw.astype(jnp.float32)

    def bn(y, sb):
        s, b = sb
        return y * s[None, :, None, None] + b[None, :, None, None]

    h = x
    if params["expand_ratio"] != 1:
        w = jnp.transpose(params["w_expand"], (1, 0))[:, :, None, None]  # OIHW
        h = jax.lax.conv_general_dilated(h, w, (1, 1), "VALID",
                                         dimension_numbers=("NCHW", "OIHW", "NCHW"))
        h = jnp.clip(bn(h, params["bn1"]), 0.0, 6.0)

    wd = jnp.transpose(params["w_dw"].reshape(3, 3, hidden), (2, 0, 1))[:, None]  # (hid,1,3,3)
    h = jax.lax.conv_general_dilated(h, wd, (stride, stride), ((1, 1), (1, 1)),
                                     dimension_numbers=("NCHW", "OIHW", "NCHW"),
                                     feature_group_count=hidden)
    h = jnp.clip(bn(h, params["bn2"]), 0.0, 6.0)

    wp = jnp.transpose(params["w_proj"], (1, 0))[:, :, None, None]
    h = jax.lax.conv_general_dilated(h, wp, (1, 1), "VALID",
                                     dimension_numbers=("NCHW", "OIHW", "NCHW"))
    h = bn(h, params["bn3"])
    return x + h if identity else h


# ---------------------------------------------------------------------------
if __name__ == "__main__":
    key = jax.random.PRNGKey(0)
    k_x, k_p = jax.random.split(key)

    # Module config: inp=4, oup=4, stride=1, expand_ratio=6 -> identity branch.
    inp, oup, stride, expand_ratio = 4, 4, 1, 6
    N, H, W = 2, 16, 16

    x = jax.random.normal(k_x, (N, inp, H, W), jnp.float32)   # NCHW like PyTorch
    params = init_inverted_residual_params(k_p, inp, oup, expand_ratio)

    out = inverted_residual_forward(params, x, inp=inp, oup=oup, stride=stride)
    out = jax.block_until_ready(out)

    ref = jax.block_until_ready(
        reference_forward(params, x, inp=inp, oup=oup, stride=stride))
    assert out.shape == (N, oup, H, W) and out.dtype == jnp.float32
    max_err = float(jnp.max(jnp.abs(out - ref)))
    assert jnp.allclose(out, ref, atol=1e-3, rtol=1e-3), max_err

    print("KERNEL_OK")
</pallas_src>

<mosaic_0001>
module attributes {stable_mosaic.version = 11 : i64} {
  func.func @_fused_inverted_residual_kernel(%arg0: i32, %arg1: i32, %arg2: memref<1x4x290xf32, #tpu.memory_space<vmem>>, %arg3: memref<24x4xf32, #tpu.memory_space<vmem>>, %arg4: memref<24x1xf32, #tpu.memory_space<vmem>>, %arg5: memref<24x1xf32, #tpu.memory_space<vmem>>, %arg6: memref<24x9xf32, #tpu.memory_space<vmem>>, %arg7: memref<24x1xf32, #tpu.memory_space<vmem>>, %arg8: memref<24x1xf32, #tpu.memory_space<vmem>>, %arg9: memref<4x24xf32, #tpu.memory_space<vmem>>, %arg10: memref<4x1xf32, #tpu.memory_space<vmem>>, %arg11: memref<4x1xf32, #tpu.memory_space<vmem>>, %arg12: memref<1x4x128xf32, #tpu.memory_space<vmem>>, %arg13: memref<24x162xf32, #tpu.memory_space<vmem>>) attributes {dimension_semantics = [#tpu.dimension_semantics<parallel>, #tpu.dimension_semantics<parallel>], iteration_bounds = array<i64: 2, 2>, scalar_prefetch = 0 : i64, scratch_operands = 1 : i64, tpu.core_type = #tpu.core_type<tc>, window_params = [{transform_indices = @transform_0, window_bounds = array<i64: 1, 4, 290>}, {pipeline_mode = #tpu.pipeline_mode<synchronous>, transform_indices = @transform_1, window_bounds = array<i64: 24, 4>}, {pipeline_mode = #tpu.pipeline_mode<synchronous>, transform_indices = @transform_2, window_bounds = array<i64: 24, 1>}, {pipeline_mode = #tpu.pipeline_mode<synchronous>, transform_indices = @transform_3, window_bounds = array<i64: 24, 1>}, {pipeline_mode = #tpu.pipeline_mode<synchronous>, transform_indices = @transform_4, window_bounds = array<i64: 24, 9>}, {pipeline_mode = #tpu.pipeline_mode<synchronous>, transform_indices = @transform_5, window_bounds = array<i64: 24, 1>}, {pipeline_mode = #tpu.pipeline_mode<synchronous>, transform_indices = @transform_6, window_bounds = array<i64: 24, 1>}, {pipeline_mode = #tpu.pipeline_mode<synchronous>, transform_indices = @transform_7, window_bounds = array<i64: 4, 24>}, {pipeline_mode = #tpu.pipeline_mode<synchronous>, transform_indices = @transform_8, window_bounds = array<i64: 4, 1>}, {pipeline_mode = #tpu.pipeline_mode<synchronous>, transform_indices = @transform_9, window_bounds = array<i64: 4, 1>}, {transform_indices = @transform_10, window_bounds = array<i64: 1, 4, 128>}]} {
    %c128_i32 = arith.constant 128 : i32
    %0 = arith.muli %arg1, %c128_i32 : i32
    %1 = tpu.assume_multiple %0, 128 : i32
    %c0 = arith.constant 0 : index
    %c0_0 = arith.constant 0 : index
    %2 = arith.index_cast %1 : i32 to index
    %3 = vector.load %arg2[%c0, %c0_0, %2] : memref<1x4x290xf32, #tpu.memory_space<vmem>>, vector<1x4x162xf32>
    %4 = vector.shape_cast %3 : vector<1x4x162xf32> to vector<4x162xf32>
    %cst = arith.constant 0.000000e+00 : f32
    %5 = vector.broadcast %cst : f32 to vector<24x162xf32>
    %c0_1 = arith.constant 0 : index
    %c0_2 = arith.constant 0 : index
    %6 = vector.load %arg3[%c0_1, %c0_2] : memref<24x4xf32, #tpu.memory_space<vmem>>, vector<24x1xf32>
    %7 = vector.extract_strided_slice %4 {offsets = [0, 0], sizes = [1, 162], strides = [1, 1]} : vector<4x162xf32> to vector<1x162xf32>
    %8 = vector.broadcast %6 : vector<24x1xf32> to vector<24x162xf32>
    %9 = vector.broadcast %7 : vector<1x162xf32> to vector<24x162xf32>
    %10 = arith.mulf %8, %9 : vector<24x162xf32>
    %11 = arith.addf %5, %10 : vector<24x162xf32>
    %c0_3 = arith.constant 0 : index
    %c1 = arith.constant 1 : index
    %12 = vector.load %arg3[%c0_3, %c1] : memref<24x4xf32, #tpu.memory_space<vmem>>, vector<24x1xf32>
    %13 = vector.extract_strided_slice %4 {offsets = [1, 0], sizes = [1, 162], strides = [1, 1]} : vector<4x162xf32> to vector<1x162xf32>
    %14 = vector.broadcast %12 : vector<24x1xf32> to vector<24x162xf32>
    %15 = vector.broadcast %13 : vector<1x162xf32> to vector<24x162xf32>
    %16 = arith.mulf %14, %15 : vector<24x162xf32>
    %17 = arith.addf %11, %16 : vector<24x162xf32>
    %c0_4 = arith.constant 0 : index
    %c2 = arith.constant 2 : index
    %18 = vector.load %arg3[%c0_4, %c2] : memref<24x4xf32, #tpu.memory_space<vmem>>, vector<24x1xf32>
    %19 = vector.extract_strided_slice %4 {offsets = [2, 0], sizes = [1, 162], strides = [1, 1]} : vector<4x162xf32> to vector<1x162xf32>
    %20 = vector.broadcast %18 : vector<24x1xf32> to vector<24x162xf32>
    %21 = vector.broadcast %19 : vector<1x162xf32> to vector<24x162xf32>
    %22 = arith.mulf %20, %21 : vector<24x162xf32>
    %23 = arith.addf %17, %22 : vector<24x162xf32>
    %c0_5 = arith.constant 0 : index
    %c3 = arith.constant 3 : index
    %24 = vector.load %arg3[%c0_5, %c3] : memref<24x4xf32, #tpu.memory_space<vmem>>, vector<24x1xf32>
    %25 = vector.extract_strided_slice %4 {offsets = [3, 0], sizes = [1, 162], strides = [1, 1]} : vector<4x162xf32> to vector<1x162xf32>
    %26 = vector.broadcast %24 : vector<24x1xf32> to vector<24x162xf32>
    %27 = vector.broadcast %25 : vector<1x162xf32> to vector<24x162xf32>
    %28 = arith.mulf %26, %27 : vector<24x162xf32>
    %29 = arith.addf %23, %28 : vector<24x162xf32>
    %c0_6 = arith.constant 0 : index
    %c0_7 = arith.constant 0 : index
    %30 = vector.load %arg4[%c0_6, %c0_7] : memref<24x1xf32, #tpu.memory_space<vmem>>, vector<24x1xf32>
    %31 = vector.broadcast %30 : vector<24x1xf32> to vector<24x162xf32>
    %32 = arith.mulf %29, %31 : vector<24x162xf32>
    %c0_8 = arith.constant 0 : index
    %c0_9 = arith.constant 0 : index
    %33 = vector.load %arg5[%c0_8, %c0_9] : memref<24x1xf32, #tpu.memory_space<vmem>>, vector<24x1xf32>
    %34 = vector.broadcast %33 : vector<24x1xf32> to vector<24x162xf32>
    %35 = arith.addf %32, %34 : vector<24x162xf32>
    %cst_10 = arith.constant 0.000000e+00 : f32
    %cst_11 = arith.constant 6.000000e+00 : f32
    %36 = vector.broadcast %cst_10 : f32 to vector<24x162xf32>
    %37 = arith.maximumf %36, %35 : vector<24x162xf32>
    %38 = vector.broadcast %cst_11 : f32 to vector<24x162xf32>
    %39 = arith.minimumf %38, %37 : vector<24x162xf32>
    %40 = tpu.iota {dimensions = array<i32: 1>} : vector<1x162xi32>
    %c0_i32 = arith.constant 0 : i32
    %41 = arith.cmpi eq, %arg1, %c0_i32 : i32
    %c1_i32 = arith.constant 1 : i32
    %42 = arith.cmpi eq, %arg1, %c1_i32 : i32
    %c17_i32 = arith.constant 17 : i32
    %43 = vector.broadcast %c17_i32 : i32 to vector<1x162xi32>
    %44 = arith.cmpi slt, %40, %43 : vector<1x162xi32>
    %45 = vector.broadcast %41 : i1 to vector<1x162xi1>
    %46 = arith.andi %45, %44 : vector<1x162xi1>
    %c145_i32 = arith.constant 145 : i32
    %47 = vector.broadcast %c145_i32 : i32 to vector<1x162xi32>
    %48 = arith.cmpi sge, %40, %47 : vector<1x162xi32>
    %49 = vector.broadcast %42 : i1 to vector<1x162xi1>
    %50 = arith.andi %49, %48 : vector<1x162xi1>
    %51 = arith.ori %46, %50 : vector<1x162xi1>
    %cst_12 = arith.constant 0.000000e+00 : f32
    %52 = vector.shape_cast %51 : vector<1x162xi1> to vector<1x162xi1>
    %53 = vector.broadcast %52 : vector<1x162xi1> to vector<24x162xi1>
    %54 = vector.broadcast %cst_12 : f32 to vector<24x162xf32>
    %55 = arith.select %53, %54, %39 : vector<24x162xi1>, vector<24x162xf32>
    %c0_13 = arith.constant 0 : index
    %c0_14 = arith.constant 0 : index
    %56 = vector.load %arg13[%c0_13, %c0_14] : memref<24x162xf32, #tpu.memory_space<vmem>>, vector<24x162xf32>
    tpu.vector_store %arg13[%c0_13, %c0_14], %55 {strides = array<i32>} : memref<24x162xf32, #tpu.memory_space<vmem>>, vector<24x162xf32>,
    %57 = tpu.iota {dimensions = array<i32: 1>} : vector<1x128xi32>
    %c16_i32 = arith.constant 16 : i32
    %c0_i32_15 = arith.constant 0 : i32
    %58 = arith.cmpi eq, %c16_i32, %c0_i32_15 : i32
    %c1_i32_16 = arith.constant 1 : i32
    %59 = arith.select %58, %c1_i32_16, %c16_i32 : i32
    %60 = vector.broadcast %59 : i32 to vector<1x128xi32>
    %61 = arith.remsi %57, %60 : vector<1x128xi32>
    %c0_i32_17 = arith.constant 0 : i32
    %62 = vector.broadcast %c0_i32_17 : i32 to vector<1x128xi32>
    %63 = arith.cmpi ne, %61, %62 : vector<1x128xi32>
    %c0_i32_18 = arith.constant 0 : i32
    %64 = vector.broadcast %c0_i32_18 : i32 to vector<1x128xi32>
    %65 = arith.cmpi slt, %61, %64 : vector<1x128xi32>
    %c0_i32_19 = arith.constant 0 : i32
    %66 = arith.cmpi slt, %59, %c0_i32_19 : i32
    %67 = vector.broadcast %66 : i1 to vector<1x128xi1>
    %68 = vector.broadcast %67 : vector<1x128xi1> to vector<1x128xi1>
    %69 = arith.xori %65, %68 : vector<1x128xi1>
    %70 = arith.andi %69, %63 : vector<1x128xi1>
    %71 = vector.broadcast %59 : i32 to vector<1x128xi32>
    %72 = arith.addi %61, %71 : vector<1x128xi32>
    %73 = arith.select %70, %72, %61 : vector<1x128xi1>, vector<1x128xi32>
    %c0_i32_20 = arith.constant 0 : i32
    %74 = vector.broadcast %c0_i32_20 : i32 to vector<1x128xi32>
    %75 = arith.cmpi ne, %73, %74 : vector<1x128xi32>
    %c15_i32 = arith.constant 15 : i32
    %76 = vector.broadcast %c15_i32 : i32 to vector<1x128xi32>
    %77 = arith.cmpi ne, %73, %76 : vector<1x128xi32>
    %cst_21 = arith.constant 0.000000e+00 : f32
    %78 = vector.broadcast %cst_21 : f32 to vector<24x128xf32>
    %c0_22 = arith.constant 0 : index
    %c0_23 = arith.constant 0 : index
    %79 = vector.load %arg13[%c0_22, %c0_23] : memref<24x162xf32, #tpu.memory_space<vmem>>, vector<24x128xf32>
    %cst_24 = arith.constant 0.000000e+00 : f32
    %80 = vector.shape_cast %75 : vector<1x128xi1> to vector<1x128xi1>
    %81 = vector.broadcast %80 : vector<1x128xi1> to vector<24x128xi1>
    %82 = vector.broadcast %cst_24 : f32 to vector<24x128xf32>
    %83 = arith.select %81, %79, %82 : vector<24x128xi1>, vector<24x128xf32>
    %c0_25 = arith.constant 0 : index
    %c0_26 = arith.constant 0 : index
    %84 = vector.load %arg6[%c0_25, %c0_26] : memref<24x9xf32, #tpu.memory_space<vmem>>, vector<24x1xf32>
    %85 = vector.broadcast %84 : vector<24x1xf32> to vector<24x128xf32>
    %86 = arith.mulf %85, %83 : vector<24x128xf32>
    %87 = arith.addf %78, %86 : vector<24x128xf32>
    %c0_27 = arith.constant 0 : index
    %c1_28 = arith.constant 1 : index
    %88 = vector.load %arg13[%c0_27, %c1_28] : memref<24x162xf32, #tpu.memory_space<vmem>>, vector<24x128xf32>
    %c0_29 = arith.constant 0 : index
    %c1_30 = arith.constant 1 : index
    %89 = vector.load %arg6[%c0_29, %c1_30] : memref<24x9xf32, #tpu.memory_space<vmem>>, vector<24x1xf32>
    %90 = vector.broadcast %89 : vector<24x1xf32> to vector<24x128xf32>
    %91 = arith.mulf %90, %88 : vector<24x128xf32>
    %92 = arith.addf %87, %91 : vector<24x128xf32>
    %c0_31 = arith.constant 0 : index
    %c2_32 = arith.constant 2 : index
    %93 = vector.load %arg13[%c0_31, %c2_32] : memref<24x162xf32, #tpu.memory_space<vmem>>, vector<24x128xf32>
    %cst_33 = arith.constant 0.000000e+00 : f32
    %94 = vector.shape_cast %77 : vector<1x128xi1> to vector<1x128xi1>
    %95 = vector.broadcast %94 : vector<1x128xi1> to vector<24x128xi1>
    %96 = vector.broadcast %cst_33 : f32 to vector<24x128xf32>
    %97 = arith.select %95, %93, %96 : vector<24x128xi1>, vector<24x128xf32>
    %c0_34 = arith.constant 0 : index
    %c2_35 = arith.constant 2 : index
    %98 = vector.load %arg6[%c0_34, %c2_35] : memref<24x9xf32, #tpu.memory_space<vmem>>, vector<24x1xf32>
    %99 = vector.broadcast %98 : vector<24x1xf32> to vector<24x128xf32>
    %100 = arith.mulf %99, %97 : vector<24x128xf32>
    %101 = arith.addf %92, %100 : vector<24x128xf32>
    %c0_36 = arith.constant 0 : index
    %c16 = arith.constant 16 : index
    %102 = vector.load %arg13[%c0_36, %c16] : memref<24x162xf32, #tpu.memory_space<vmem>>, vector<24x128xf32>
    %cst_37 = arith.constant 0.000000e+00 : f32
    %103 = vector.shape_cast %75 : vector<1x128xi1> to vector<1x128xi1>
    %104 = vector.broadcast %103 : vector<1x128xi1> to vector<24x128xi1>
    %105 = vector.broadcast %cst_37 : f32 to vector<24x128xf32>
    %106 = arith.select %104, %102, %105 : vector<24x128xi1>, vector<24x128xf32>
    %c0_38 = arith.constant 0 : index
    %c3_39 = arith.constant 3 : index
    %107 = vector.load %arg6[%c0_38, %c3_39] : memref<24x9xf32, #tpu.memory_space<vmem>>, vector<24x1xf32>
    %108 = vector.broadcast %107 : vector<24x1xf32> to vector<24x128xf32>
    %109 = arith.mulf %108, %106 : vector<24x128xf32>
    %110 = arith.addf %101, %109 : vector<24x128xf32>
    %c0_40 = arith.constant 0 : index
    %c17 = arith.constant 17 : index
    %111 = vector.load %arg13[%c0_40, %c17] : memref<24x162xf32, #tpu.memory_space<vmem>>, vector<24x128xf32>
    %c0_41 = arith.constant 0 : index
    %c4 = arith.constant 4 : index
    %112 = vector.load %arg6[%c0_41, %c4] : memref<24x9xf32, #tpu.memory_space<vmem>>, vector<24x1xf32>
    %113 = vector.broadcast %112 : vector<24x1xf32> to vector<24x128xf32>
    %114 = arith.mulf %113, %111 : vector<24x128xf32>
    %115 = arith.addf %110, %114 : vector<24x128xf32>
    %c0_42 = arith.constant 0 : index
    %c18 = arith.constant 18 : index
    %116 = vector.load %arg13[%c0_42, %c18] : memref<24x162xf32, #tpu.memory_space<vmem>>, vector<24x128xf32>
    %cst_43 = arith.constant 0.000000e+00 : f32
    %117 = vector.shape_cast %77 : vector<1x128xi1> to vector<1x128xi1>
    %118 = vector.broadcast %117 : vector<1x128xi1> to vector<24x128xi1>
    %119 = vector.broadcast %cst_43 : f32 to vector<24x128xf32>
    %120 = arith.select %118, %116, %119 : vector<24x128xi1>, vector<24x128xf32>
    %c0_44 = arith.constant 0 : index
    %c5 = arith.constant 5 : index
    %121 = vector.load %arg6[%c0_44, %c5] : memref<24x9xf32, #tpu.memory_space<vmem>>, vector<24x1xf32>
    %122 = vector.broadcast %121 : vector<24x1xf32> to vector<24x128xf32>
    %123 = arith.mulf %122, %120 : vector<24x128xf32>
    %124 = arith.addf %115, %123 : vector<24x128xf32>
    %c0_45 = arith.constant 0 : index
    %c32 = arith.constant 32 : index
    %125 = vector.load %arg13[%c0_45, %c32] : memref<24x162xf32, #tpu.memory_space<vmem>>, vector<24x128xf32>
    %cst_46 = arith.constant 0.000000e+00 : f32
    %126 = vector.shape_cast %75 : vector<1x128xi1> to vector<1x128xi1>
    %127 = vector.broadcast %126 : vector<1x128xi1> to vector<24x128xi1>
    %128 = vector.broadcast %cst_46 : f32 to vector<24x128xf32>
    %129 = arith.select %127, %125, %128 : vector<24x128xi1>, vector<24x128xf32>
    %c0_47 = arith.constant 0 : index
    %c6 = arith.constant 6 : index
    %130 = vector.load %arg6[%c0_47, %c6] : memref<24x9xf32, #tpu.memory_space<vmem>>, vector<24x1xf32>
    %131 = vector.broadcast %130 : vector<24x1xf32> to vector<24x128xf32>
    %132 = arith.mulf %131, %129 : vector<24x128xf32>
    %133 = arith.addf %124, %132 : vector<24x128xf32>
    %c0_48 = arith.constant 0 : index
    %c33 = arith.constant 33 : index
    %134 = vector.load %arg13[%c0_48, %c33] : memref<24x162xf32, #tpu.memory_space<vmem>>, vector<24x128xf32>
    %c0_49 = arith.constant 0 : index
    %c7 = arith.constant 7 : index
    %135 = vector.load %arg6[%c0_49, %c7] : memref<24x9xf32, #tpu.memory_space<vmem>>, vector<24x1xf32>
    %136 = vector.broadcast %135 : vector<24x1xf32> to vector<24x128xf32>
    %137 = arith.mulf %136, %134 : vector<24x128xf32>
    %138 = arith.addf %133, %137 : vector<24x128xf32>
    %c0_50 = arith.constant 0 : index
    %c34 = arith.constant 34 : index
    %139 = vector.load %arg13[%c0_50, %c34] : memref<24x162xf32, #tpu.memory_space<vmem>>, vector<24x128xf32>
    %cst_51 = arith.constant 0.000000e+00 : f32
    %140 = vector.shape_cast %77 : vector<1x128xi1> to vector<1x128xi1>
    %141 = vector.broadcast %140 : vector<1x128xi1> to vector<24x128xi1>
    %142 = vector.broadcast %cst_51 : f32 to vector<24x128xf32>
    %143 = arith.select %141, %139, %142 : vector<24x128xi1>, vector<24x128xf32>
    %c0_52 = arith.constant 0 : index
    %c8 = arith.constant 8 : index
    %144 = vector.load %arg6[%c0_52, %c8] : memref<24x9xf32, #tpu.memory_space<vmem>>, vector<24x1xf32>
    %145 = vector.broadcast %144 : vector<24x1xf32> to vector<24x128xf32>
    %146 = arith.mulf %145, %143 : vector<24x128xf32>
    %147 = arith.addf %138, %146 : vector<24x128xf32>
    %c0_53 = arith.constant 0 : index
    %c0_54 = arith.constant 0 : index
    %148 = vector.load %arg7[%c0_53, %c0_54] : memref<24x1xf32, #tpu.memory_space<vmem>>, vector<24x1xf32>
    %149 = vector.broadcast %148 : vector<24x1xf32> to vector<24x128xf32>
    %150 = arith.mulf %147, %149 : vector<24x128xf32>
    %c0_55 = arith.constant 0 : index
    %c0_56 = arith.constant 0 : index
    %151 = vector.load %arg8[%c0_55, %c0_56] : memref<24x1xf32, #tpu.memory_space<vmem>>, vector<24x1xf32>
    %152 = vector.broadcast %151 : vector<24x1xf32> to vector<24x128xf32>
    %153 = arith.addf %150, %152 : vector<24x128xf32>
    %cst_57 = arith.constant 0.000000e+00 : f32
    %cst_58 = arith.constant 6.000000e+00 : f32
    %154 = vector.broadcast %cst_57 : f32 to vector<24x128xf32>
    %155 = arith.maximumf %154, %153 : vector<24x128xf32>
    %156 = vector.broadcast %cst_58 : f32 to vector<24x128xf32>
    %157 = arith.minimumf %156, %155 : vector<24x128xf32>
    %c0_59 = arith.constant 0 : index
    %c0_60 = arith.constant 0 : index
    %158 = vector.load %arg9[%c0_59, %c0_60] : memref<4x24xf32, #tpu.memory_space<vmem>>, vector<4x24xf32>
    %cst_61 = arith.constant dense<0.000000e+00> : vector<4x128xf32>
    %159 = tpu.matmul %158, %157, %cst_61 {dimension_numbers = #tpu.dot_dimension_numbers<[1], [0], [0], [1], [0, 0, 1, 1], [], []>} : vector<4x24xf32>, vector<24x128xf32>, vector<4x128xf32> -> vector<4x128xf32>
    %c0_62 = arith.constant 0 : index
    %c0_63 = arith.constant 0 : index
    %160 = vector.load %arg10[%c0_62, %c0_63] : memref<4x1xf32, #tpu.memory_space<vmem>>, vector<4x1xf32>
    %161 = vector.broadcast %160 : vector<4x1xf32> to vector<4x128xf32>
    %162 = arith.mulf %159, %161 : vector<4x128xf32>
    %c0_64 = arith.constant 0 : index
    %c0_65 = arith.constant 0 : index
    %163 = vector.load %arg11[%c0_64, %c0_65] : memref<4x1xf32, #tpu.memory_space<vmem>>, vector<4x1xf32>
    %164 = vector.broadcast %163 : vector<4x1xf32> to vector<4x128xf32>
    %165 = arith.addf %162, %164 : vector<4x128xf32>
    %166 = vector.extract_strided_slice %4 {offsets = [0, 17], sizes = [4, 128], strides = [1, 1]} : vector<4x162xf32> to vector<4x128xf32>
    %167 = arith.addf %165, %166 : vector<4x128xf32>
    %c0_66 = arith.constant 0 : index
    %c0_67 = arith.constant 0 : index
    %c0_68 = arith.constant 0 : index
    %168 = vector.load %arg12[%c0_66, %c0_67, %c0_68] : memref<1x4x128xf32, #tpu.memory_space<vmem>>, vector<1x4x128xf32>
    %169 = vector.shape_cast %168 : vector<1x4x128xf32> to vector<4x128xf32>
    %170 = vector.shape_cast %167 : vector<4x128xf32> to vector<1x4x128xf32>
    tpu.vector_store %arg12[%c0_66, %c0_67, %c0_68], %170 {strides = array<i32>} : memref<1x4x128xf32, #tpu.memory_space<vmem>>, vector<1x4x128xf32>,
    return
  }
  func.func @transform_0(%arg0: i32, %arg1: i32) -> (i32, i32, i32) {
    %c0_i32 = arith.constant 0 : i32
    %c0_i32_0 = arith.constant 0 : i32
    %c0_i32_1 = arith.constant 0 : i32
    return %arg0, %c0_i32, %c0_i32_0 : i32, i32, i32
  }
  func.func @transform_1(%arg0: i32, %arg1: i32) -> (i32, i32) {
    %c0_i32 = arith.constant 0 : i32
    %c0_i32_0 = arith.constant 0 : i32
    %c0_i32_1 = arith.constant 0 : i32
    return %c0_i32, %c0_i32_0 : i32, i32
  }
  func.func @transform_2(%arg0: i32, %arg1: i32) -> (i32, i32) {
    %c0_i32 = arith.constant 0 : i32
    %c0_i32_0 = arith.constant 0 : i32
    %c0_i32_1 = arith.constant 0 : i32
    return %c0_i32, %c0_i32_0 : i32, i32
  }
  func.func @transform_3(%arg0: i32, %arg1: i32) -> (i32, i32) {
    %c0_i32 = arith.constant 0 : i32
    %c0_i32_0 = arith.constant 0 : i32
    %c0_i32_1 = arith.constant 0 : i32
    return %c0_i32, %c0_i32_0 : i32, i32
  }
  func.func @transform_4(%arg0: i32, %arg1: i32) -> (i32, i32) {
    %c0_i32 = arith.constant 0 : i32
    %c0_i32_0 = arith.constant 0 : i32
    %c0_i32_1 = arith.constant 0 : i32
    return %c0_i32, %c0_i32_0 : i32, i32
  }
  func.func @transform_5(%arg0: i32, %arg1: i32) -> (i32, i32) {
    %c0_i32 = arith.constant 0 : i32
    %c0_i32_0 = arith.constant 0 : i32
    %c0_i32_1 = arith.constant 0 : i32
    return %c0_i32, %c0_i32_0 : i32, i32
  }
  func.func @transform_6(%arg0: i32, %arg1: i32) -> (i32, i32) {
    %c0_i32 = arith.constant 0 : i32
    %c0_i32_0 = arith.constant 0 : i32
    %c0_i32_1 = arith.constant 0 : i32
    return %c0_i32, %c0_i32_0 : i32, i32
  }
  func.func @transform_7(%arg0: i32, %arg1: i32) -> (i32, i32) {
    %c0_i32 = arith.constant 0 : i32
    %c0_i32_0 = arith.constant 0 : i32
    %c0_i32_1 = arith.constant 0 : i32
    return %c0_i32, %c0_i32_0 : i32, i32
  }
  func.func @transform_8(%arg0: i32, %arg1: i32) -> (i32, i32) {
    %c0_i32 = arith.constant 0 : i32
    %c0_i32_0 = arith.constant 0 : i32
    %c0_i32_1 = arith.constant 0 : i32
    return %c0_i32, %c0_i32_0 : i32, i32
  }
  func.func @transform_9(%arg0: i32, %arg1: i32) -> (i32, i32) {
    %c0_i32 = arith.constant 0 : i32
    %c0_i32_0 = arith.constant 0 : i32
    %c0_i32_1 = arith.constant 0 : i32
    return %c0_i32, %c0_i32_0 : i32, i32
  }
  func.func @transform_10(%arg0: i32, %arg1: i32) -> (i32, i32, i32) {
    %c0_i32 = arith.constant 0 : i32
    %c0_i32_0 = arith.constant 0 : i32
    return %arg0, %c0_i32, %arg1 : i32, i32, i32
  }
}

</mosaic_0001>

<bundles_post_ra>
// kernel: tpu_custom_call.1
= control target key start
LH: loop header
LB: loop body
LE: loop exit
PB: predicated region body
PF: predicated region fallthrough
CT: control target
= control target key end

     0   :  { %s2005_s0 = inlined_call_operand.vmem [shape: f32[2,4,290], index: 0, kind: input, shape index: {}]   ;;  %s2006_s1 = inlined_call_operand.vmem [shape: f32[24,4], index: 1, kind: input, shape index: {}]   ;;  %s2007_s2 = inlined_call_operand.vmem [shape: f32[24,1], index: 2, kind: input, shape index: {}]   ;;  %s2008_s3 = inlined_call_operand.vmem [shape: f32[24,1], index: 3, kind: input, shape index: {}]   ;;  %s2009_s4 = inlined_call_operand.vmem [shape: f32[24,9], index: 4, kind: input, shape index: {}]   ;;  %s2010_s5 = inlined_call_operand.vmem [shape: f32[24,1], index: 5, kind: input, shape index: {}]   ;;  %s2011_s6 = inlined_call_operand.vmem [shape: f32[24,1], index: 6, kind: input, shape index: {}]   ;;  %s2012_s7 = inlined_call_operand.vmem [shape: f32[4,24], index: 7, kind: input, shape index: {}]   ;;  %s2013_s8 = inlined_call_operand.vmem [shape: f32[4,1], index: 8, kind: input, shape index: {}]   ;;  %s2014_s9 = inlined_call_operand.vmem [shape: f32[4,1], index: 9, kind: input, shape index: {}]   ;;  %s2015_s10 = inlined_call_operand.hbm [shape: f32[2,4,256], index: 10, kind: output, shape index: {}]  }
   0x1   :  { %2019 = sst [smem:[#allocation9_spill]] %s2006_s1 }
   0x2   :  { %15 = vsyncpa [#allocation4], 0 }
   0x3   :  { %17 = vsyncpa [#allocation4 + $0x1], 0  ;;  %s1495_s13 = smov 0   ;;  %s1497_s14 = smov 0  }
   0x4   :  { %s1499_s15 = smov 0   ;;  %s1501_s16 = smov 0  }
   0x5   :  { %s1503_s17 = smov 0   ;;  %s1505_s18 = smov 0  }
   0x6   :  { %s1507_s19 = smov 0   ;;  %s1509_s20 = smov 0  }
   0x7 LB: > { %2020 = sst [smem:[#allocation6_spill]] %s1393_s13  ;;  %s1191_s21 = sadd.s32 4294967295, %s1421_s20   ;;  %s1421_s20 = sphi %s1509_s20, %s23_s20   ;;  %s1417_s19 = sphi %s1507_s19, %s2041_s19   ;;  %s1413_s18 = sphi %s1505_s18, %s2036_s18   ;;  %s1409_s17 = sphi %s1503_s17, %s2040_s17   ;;  %s1405_s16 = sphi %s1501_s16, %s2035_s16   ;;  %s1401_s15 = sphi %s1499_s15, %s2039_s15   ;;  %s1397_s14 = sphi %s1497_s14, %s2038_s14   ;;  %s1393_s13 = sphi %s1495_s13, %s2037_s13  }
   0x8   : > { %2021 = sst [smem:[#allocation7_spill]] %s1413_s18  ;;  %s1192_s22 = sadd.s32 4294967294, %s1421_s20  }
   0x9   : > { %s32_s23 = sadd.s32 1, %s1413_s18  ;;  %s35_s24 = sadd.s32 1, %s1417_s19 }
   0xa   : > { %p33_p0 = scmp.ge.s32.totalorder %s32_s23, 2  ;;  %p269_p1 = scmp.ne.s32.totalorder %s1401_s15, %s1397_s14 }
   0xb   : > { %p270_p2 = scmp.eq.s32.totalorder %s1191_s21, 3  ;;  %p275_p5 = scmp.ne.s32.totalorder %s1397_s14, %s1393_s13 }
   0xc   : > { %s2043_s23 = smov (%p33_p0, %s32_s23), 0  ;;  %s2045_s24 = smov (!%p33_p0, %s35_s24), %s1417_s19 }
   0xd   : > { %2022 = sst [smem:[#allocation8_spill]] %s2043_s23  ;;  %s255_s25 = ssub.s32 %s1413_s18, %s2043_s23 }
   0xe   : > { %p1546_p3 = por %p270_p2, %p269_p1  ;;  %p37_p4 = scmp.ge.s32.totalorder %s2045_s24, 2 }
   0xf   : > { %p276_p6 = scmp.eq.s32.totalorder %s1192_s22, 3  ;;  %p1195_p7 = scmp.ge.s32.totalorder %s1421_s20, 1 }
  0x10   : > { %s2047_s24 = smov (%p37_p4, %s2045_s24), 0  ;;  %p329_p9 = scmp.lt.s32.totalorder %s1421_s20, 5 }
  0x11   : > { %p1555_p8 = por %p276_p6, %p275_p5  ;;  %s254_s28 = ssub.s32 %s1417_s19, %s2047_s24 }
  0x12   : > { %s259_s29 = sadd.s32 1, %s1401_s15  ;;  %s256_s30 = sor.u32 %s255_s25, %s254_s28 }
  0x13   : > { %p330_p10 = pnand %p1195_p7, %p329_p9  ;;  %p257_p11 = scmp.eq.s32.totalorder %s256_s30, 0 }
  0x14   : > { %s2025_s1 = sld [smem:[#allocation9_spill]] (!%p330_p10)  ;;  %p367_p12 = scmp.lt.s32.totalorder (!%p330_p10), %s1409_s17, 1 }
  0x15   : > { %s1564_s11 = scalar_select %p257_p11, %s1401_s15, %s259_s29  }
  0x16   : > { %333 = sbr.rel (%p330_p10) target bundleno = 679 (0x2a7), region = 60  ;;  %s1198_s12 = sshll.u32 (!%p330_p10), %s1405_s16, 7 }
  0x17   : > { %s373_s22 = sshra.s32 (!%p330_p10), %s1198_s12, 7  ;;  %p568_p13 = scmp.eq.s32.totalorder (!%p330_p10), %s1405_s16, 0 }
  0x18   : > { %s1199_s28 = sshll.u32 (!%p330_p10), %s373_s22, 2  ;;  %p569_p0 = scmp.eq.s32.totalorder (!%p330_p10), %s1405_s16, 1 }
  0x19   : > { %s1428_s12 = smov (!%p330_p10), 126   ;;  %s1431_s22 = smov (!%p330_p10), 127  }
  0x1a   : > { %s1432_s23 = smov (!%p330_p10), 110   ;;  %s1433_s25 = smov (!%p330_p10), 111  }
  0x1b   : > { %v380_v0 = vld [vmem:[%s2025_s1 + $0x10] sm:$0xff]  ;;  %v379_v1 = vld [vmem:[%s2025_s1 + $0x8] sm:$0xff]  ;;  %v378_v2 = vld [vmem:[%s2025_s1] sm:$0xff]  ;;  %v1423_v3 = vmov 1   ;;  %v1424_v4 = vmov 0   ;;  %v1425_v6 = vmov 2   ;;  %v565_v40 = vlaneseq }
  0x1c   : > { %1298 = vset.pattern.permute.xlu2 %v1423_v3  ;;  %1296 = vset.pattern.permute.xlu1 %v1424_v4  ;;  %v530_v5 = vld [vmem:[%s2008_s3 + $0x8] sm:$0xff]  ;;  %v1583_v7 = vld [vmem:[%s2009_s4] sm:$0xff]  ;;  %v1426_v8 = vmov 3   ;;  %v1597_v11 = vld [vmem:[%s2009_s4 + $0x10] sm:$0xff]  ;;  %s368_s30 = scalar_select %p367_p12, %s1409_s17, 1  ;;  %v1427_v17 = vmov 4  }
  0x1d   : > { %1295 = vset.pattern.permute.xlu0 %v1424_v4  ;;  %393 = vperm.xlu1 %1296, %v380_v0   ;;  %v506_v9 = vld [vmem:[%s2007_s2 + $0x8] sm:$0xff]  ;;  %v505_v10 = vld [vmem:[%s2007_s2] sm:$0xff]  ;;  %v507_v13 = vld [vmem:[%s2007_s2 + $0x10] sm:$0xff]  ;;  %v1665_v51 = vand.u32 127, %v565_v40  ;;  %vm597_vm6 = vcmask 277504   ;;  %s1436_s13 = smov 96  }
  0x1e   : > { %420 = vperm.xlu2 %1298, %v379_v1   ;;  %383 = vperm.xlu0 %1295, %v378_v2   ;;  %v529_v12 = vld [vmem:[%s2008_s3] sm:$0xff]  ;;  %v531_v14 = vld [vmem:[%s2008_s3 + $0x10] sm:$0xff]  ;;  %s1206_s21 = smul.u32 12, %s368_s30  ;;  %v1616_v15 = vld [vmem:[%s2009_s4 + $0x8] sm:$0xff]  ;;  %vm721_vm8 = vcmask 1031168   ;;  %s1437_s18 = smov 94  }
  0x1f   : > { %s579_s30 = scalar_select %p569_p0, 1, 0  ;;  %v567_v60 = vadd.s32 128, %v1665_v51  ;;  %vm570_vm0 = vcmp.lt.s32.totalorder %v1665_v51, 17  ;;  %vm761_vm10 = vcmask 916480   ;;  %vm691_vm11 = vcmask 1039360  }
  0x20   : > { %s371_s1 = scalar_lea.vmem %s2005_s0, %s1206_s21  ;;  %s1429_s21 = smov 112   ;;  %vm847_vm12 = vcmask 900096   ;;  %vm825_vm13 = vcmask 908288   ;;  %vm887_vm14 = vcmask 785408   ;;  %vm973_vm15 = vcmask 769024  }
  0x21   : > { %s376_s29 = scalar_lea.vmem %s371_s1, %s1199_s28  ;;  %v580_v63 = vstv %s579_s30  ;;  %vm578_vm2 = vcmp.ge.s32.totalorder %v567_v60, 145  ;;  %s1439_s28 = smov 95  }
  0x22   : > { %v377_v16 = vld [vmem:[%s376_s29] sm:$0xff]  ;;  %s572_s1 = scalar_select %p568_p13, 1, 0  ;;  %vm581_vm3 = vcmp.eq.s32.totalorder %v580_v63, 1 }
  0x23   : > { %1088 = vst [vmem:[#allocation1] ss:$2 sm:$0xff] %v377_v16  ;;  %v427_v23 = vperm.slane %v377_v16, 1  ;;  %v428_v24 = vperm.slane %v377_v16, 5  ;;  %v397_v26 = vperm.slane %v377_v16, 0  ;;  %v398_v27 = vperm.slane %v377_v16, 4  ;;  %vm1677_vm5 = vmand %vm581_vm3, %vm578_vm2 }
  0x24   : > { %v487_v29 = vperm.slane %v377_v16, 3  ;;  %v488_v30 = vperm.slane %v377_v16, 7  ;;  %v457_v33 = vperm.slane %v377_v16, 2  ;;  %v458_v34 = vperm.slane %v377_v16, 6  ;;  %s1347_s30 = scalar_lea.hbm %s2015_s10, 16 }
  0x25   : > { %1297 = vset.pattern.permute.xlu1 %v1423_v3  ;;  %v1641_v31 = vperm.slane %v427_v23, 1  ;;  %v1643_v32 = vperm.slane %v428_v24, 1  ;;  %v1645_v35 = vperm.slane %v397_v26, 0  ;;  %v1647_v36 = vperm.slane %v398_v27, 0 }
  0x26   : > { %424 = vperm.xlu2 %1298, %v380_v0   ;;  %388 = vperm.xlu0 %1295, %v379_v1   ;;  %v1649_v38 = vperm.slane %v487_v29, 3  ;;  %v1651_v39 = vperm.slane %v488_v30, 3  ;;  %v1659_v46 = vperm.slane %v457_v33, 2  ;;  %v1661_v47 = vperm.slane %v458_v34, 2 }
  0x27   : > { %416 = vperm.xlu1 %1297, %v378_v2   ;;  %v573_v61 = vstv %s572_s1 }
  0x28   : > { %vm574_vm1 = vcmp.eq.s32.totalorder %v573_v61, 1 }
  0x29   : > { %vm1673_vm4 = vmand %vm574_vm1, %vm570_vm0  ;;  %vm951_vm0 = vcmask 777216   ;;  %vm1050_vm1 = vcmask 195584  }
  0x2e   : > { %1300 = vset.pattern.permute.xlu2 %v1425_v6  ;;  %539 = vperm.xlu0 %1295, %v530_v5  }
  0x2f   : > { %454 = vperm.xlu2 %1300, %v380_v0   ;;  %1299 = vset.pattern.permute.xlu1 %v1425_v6 }
  0x30   : > { %450 = vperm.xlu1 %1299, %v379_v1  }
  0x36   : > { %1305 = vset.pattern.permute.xlu0 %v1423_v3 }
  0x37   : > { %1302 = vset.pattern.permute.xlu2 %v1426_v8  ;;  %656 = vperm.xlu0 %1305, %v1583_v7  }
  0x38   : > { %480 = vperm.xlu2 %1302, %v379_v1   ;;  %1301 = vset.pattern.permute.xlu1 %v1426_v8 }
  0x39   : > { %476 = vperm.xlu1 %1301, %v378_v2  }
  0x3f   : > { %1306 = vset.pattern.permute.xlu0 %v1425_v6 }
  0x40   : > { %1304 = vset.pattern.permute.xlu2 %v1424_v4  ;;  %446 = vperm.xlu0 %1306, %v378_v2  }
  0x41   : > { %515 = vperm.xlu2 %1304, %v506_v9   ;;  %1303 = vset.pattern.permute.xlu1 %v1424_v4 }
  0x42   : > { %510 = vperm.xlu1 %1303, %v505_v10   ;;  %v1430_v10 = vmov 7  }
  0x48   : > { %740 = vperm.xlu0 %1306, %v1597_v11  }
  0x49   : > { %534 = vperm.xlu2 %1304, %v529_v12  }
  0x4a   : > { %520 = vperm.xlu1 %1303, %v507_v13  }
  0x50   : > { %1311 = vset.pattern.permute.xlu0 %v1426_v8 }
  0x51   : > { %630 = vperm.xlu2 %1304, %v1583_v7   ;;  %484 = vperm.xlu0 %1311, %v380_v0  }
  0x52   : > { %544 = vperm.xlu1 %1303, %v531_v14  }
  0x59   : > { %640 = vperm.xlu2 %1304, %v1597_v11   ;;  %776 = vperm.xlu0 %1311, %v1616_v15  }
  0x5a   : > { %635 = vperm.xlu1 %1303, %v1616_v15  }
  0x61   : > { %1308 = vset.pattern.permute.xlu2 %v1423_v3  ;;  %1316 = vset.pattern.permute.xlu0 %v1430_v10 }
  0x62   : > { %664 = vperm.xlu2 %1308, %v1597_v11   ;;  %1307 = vset.pattern.permute.xlu1 %v1423_v3 }
  0x63   : > { %660 = vperm.xlu1 %1307, %v1616_v15  }
  0x6a   : > { %1310 = vset.pattern.permute.xlu2 %v1425_v6 }
  0x6b   : > { %736 = vperm.xlu2 %1310, %v1616_v15   ;;  %1309 = vset.pattern.permute.xlu1 %v1425_v6 }
  0x6c   : > { %732 = vperm.xlu1 %1309, %v1583_v7  }
  0x73   : > { %1312 = vset.pattern.permute.xlu2 %v1426_v8 }
  0x74   : > { %772 = vperm.xlu2 %1312, %v1583_v7   ;;  %1313 = vset.pattern.permute.xlu1 %v1426_v8 }
  0x75   : > { %780 = vperm.xlu1 %1313, %v1597_v11  }
  0x78   : > { %v421_v18 = vpop.permute.xlu2 %420 }
  0x79   : > { %v435_v41 = vmul.f32 %v1641_v31, %v421_v18  ;;  %v436_v42 = vmul.f32 %v1643_v32, %v421_v18 }
  0x7c   : > { %1314 = vset.pattern.permute.xlu2 %v1427_v17 }
  0x7d   : > { %798 = vperm.xlu2 %1314, %v1597_v11   ;;  %1315 = vset.pattern.permute.xlu1 %v1427_v17 }
  0x7e   : > { %794 = vperm.xlu1 %1315, %v1616_v15  }
  0x80   : > { %v1633_v19 = vpop.permute.xlu2 %424 }
  0x85   : > { %790 = vperm.xlu2 %1314, %v1583_v7  }
  0x86   : > { %1317 = vset.pattern.permute.xlu1 %v1430_v10 }
  0x89   : > { %v1639_v22 = vpop.permute.xlu2 %454 }
  0x8d   : > { %1318 = vset.pattern.permute.xlu2 %v1430_v10 }
  0x8f   : > { %v1635_v20 = vpop.permute.xlu1 %393 }
  0x90   : > { %v1637_v21 = vpop.permute.xlu0 %383 }
  0x91   : > { %v403_v18 = vmul.f32 %v1645_v35, %v1637_v21  ;;  %v404_v23 = vmul.f32 %v1647_v36, %v1637_v21 }
  0x92   : > { %v481_v37 = vpop.permute.xlu2 %480 }
  0x93   : > { %v495_v48 = vmul.f32 %v1649_v38, %v481_v37  ;;  %v496_v49 = vmul.f32 %v1651_v39, %v481_v37 }
  0x98   : > { %v389_v25 = vpop.permute.xlu0 %388 }
  0x99   : > { %v417_v28 = vpop.permute.xlu1 %416  ;;  %v405_v43 = vmul.f32 %v1645_v35, %v389_v25  ;;  %v406_v44 = vmul.f32 %v1647_v36, %v389_v25 }
  0x9a   : > { %v433_v13 = vmul.f32 %v1641_v31, %v417_v28  ;;  %v434_v14 = vmul.f32 %v1643_v32, %v417_v28 }
  0x9b   : > { %v441_v52 = vadd.f32 %v435_v41, %v405_v43  ;;  %v442_v53 = vadd.f32 %v436_v42, %v406_v44  ;;  %v516_v62 = vpop.permute.xlu2 %515 }
  0x9c   : > { %v439_v27 = vadd.f32 %v433_v13, %v403_v18  ;;  %v440_v28 = vadd.f32 %v434_v14, %v404_v23 }
  0xa0   : > { %v540_v45 = vpop.permute.xlu0 %539 }
  0xa2   : > { %v451_v50 = vpop.permute.xlu1 %450 }
  0xa3   : > { %v465_v54 = vmul.f32 %v1659_v46, %v451_v50  ;;  %v466_v55 = vmul.f32 %v1661_v47, %v451_v50  ;;  %v535_v41 = vpop.permute.xlu2 %534 }
  0xa5   : > { %v471_v56 = vadd.f32 %v465_v54, %v441_v52  ;;  %v472_v57 = vadd.f32 %v466_v55, %v442_v53  ;;  %v437_v52 = vmul.f32 %v1641_v31, %v1633_v19  ;;  %v438_v53 = vmul.f32 %v1643_v32, %v1633_v19 }
  0xa6   : > { %v407_v54 = vmul.f32 %v1645_v35, %v1635_v20  ;;  %v408_v55 = vmul.f32 %v1647_v36, %v1635_v20  ;;  %v468_v31 = vmul.f32 %v1661_v47, %v1639_v22 }
  0xa7   : > { %v501_v58 = vadd.f32 %v495_v48, %v471_v56  ;;  %v502_v59 = vadd.f32 %v496_v49, %v472_v57  ;;  %v607_v57 = vand.u32 15, %v1665_v51 }
  0xa8   : > { %v443_v19 = vadd.f32 %v437_v52, %v407_v54  ;;  %v444_v32 = vadd.f32 %v438_v53, %v408_v55 }
  0xa9   : > { %v525_v0 = vmul.f32 %v516_v62, %v501_v58  ;;  %v526_v1 = vmul.f32 %v516_v62, %v502_v59  ;;  %v1670_v2 = vpop.permute.xlu0 %656  ;;  %v467_v62 = vmul.f32 %v1659_v46, %v1639_v22  ;;  %vm1717_vm7 = vcmp.ne.s32.totalorder %v607_v57, 0 }
  0xaa   : > { %vm1825_vm9 = vcmp.ne.s32.totalorder %v607_v57, 15 }
  0xab   : > { %v549_v3 = vadd.f32 %v540_v45, %v525_v0  ;;  %v550_v5 = vadd.f32 %v540_v45, %v526_v1  ;;  %v477_v6 = vpop.permute.xlu1 %476  ;;  %v631_v63 = vpop.permute.xlu2 %630  ;;  %v473_v0 = vadd.f32 %v467_v62, %v443_v19  ;;  %v474_v1 = vadd.f32 %v468_v31, %v444_v32 }
  0xac   : > { %v493_v33 = vmul.f32 %v1649_v38, %v477_v6  ;;  %v494_v34 = vmul.f32 %v1651_v39, %v477_v6  ;;  %v1435_v62 = vmov 6  }
  0xad   : > { %v555_v8 = vmax.f32 %v549_v3, 0.0  ;;  %v556_v9 = vmax.f32 %v550_v5, 0.0 }
  0xaf   : > { %v561_v16 = vmin.f32 %v555_v8, 6.0  ;;  %v562_v17 = vmin.f32 %v556_v9, 6.0 }
  0xb1   : > { %v1689_v24 = vsel %vm1673_vm4, 0.0, %v561_v16  ;;  %v593_v25 = vsel %vm1677_vm5, 0.0, %v562_v17 }
  0xb2   : > { %v447_v26 = vpop.permute.xlu0 %446  ;;  %713 = vrot.lane.b32.xlu0 %v1689_v24, %s1428_s12  ;;  %600 = vst.msk [vmem:[#allocation2 + $0x18] sm:$0xff] %vm597_vm6, %v593_v25 }
  0xb3   : > { %v463_v29 = vmul.f32 %v1659_v46, %v447_v26  ;;  %v464_v30 = vmul.f32 %v1661_v47, %v447_v26  ;;  %v641_v25 = vpop.permute.xlu2 %640 }
  0xb4   : > { %v511_v21 = vpop.permute.xlu1 %510 }
  0xb5   : > { %v469_v37 = vadd.f32 %v463_v29, %v439_v27  ;;  %v470_v40 = vadd.f32 %v464_v30, %v440_v28  ;;  %v623_v27 = vsel %vm1717_vm7, %v1689_v24, 0.0 }
  0xb7   : > { %v499_v42 = vadd.f32 %v493_v33, %v469_v37  ;;  %v500_v43 = vadd.f32 %v494_v34, %v470_v40 }
  0xb9   : > { %v523_v44 = vmul.f32 %v511_v21, %v499_v42  ;;  %v524_v45 = vmul.f32 %v511_v21, %v500_v43  ;;  %v1737_v16 = vld [vmem:[#allocation2 + $0x18] sm:$0xff] }
  0xba   : > { %v1700_v48 = vpop.permute.xlu0 %740 }
  0xbb   : > { %v547_v49 = vadd.f32 %v535_v41, %v523_v44  ;;  %v548_v50 = vadd.f32 %v535_v41, %v524_v45 }
  0xbc   : > { %v521_v56 = vpop.permute.xlu1 %520  ;;  %v665_v12 = vpop.permute.xlu2 %664 }
  0xbd   : > { %v553_v58 = vmax.f32 %v547_v49, 0.0  ;;  %v554_v59 = vmax.f32 %v548_v50, 0.0 }
  0xbf   : > { %v559_v60 = vmin.f32 %v553_v58, 6.0  ;;  %v560_v61 = vmin.f32 %v554_v59, 6.0  ;;  %v1434_v58 = vmov 5  }
  0xc1   : > { %v1723_v35 = vsel %vm1673_vm4, 0.0, %v559_v60  ;;  %v591_v36 = vsel %vm1677_vm5, 0.0, %v560_v61 }
  0xc2   : > { %709 = vrot.lane.b32.xlu1 %v1723_v35, %s1428_s12  ;;  %v622_v22 = vsel %vm1717_vm7, %v1723_v35, 0.0  ;;  %598 = vst.msk [vmem:[#allocation2 + $0x8] sm:$0xff] %vm597_vm6, %v591_v36  ;;  %v667_v44 = vmul.f32 %v1670_v2, %v1723_v35 }
  0xc3   : > { %v485_v46 = vpop.permute.xlu0 %484  ;;  %v1733_v47 = vmul.f32 %v631_v63, %v622_v22 }
  0xc4   : > { %v497_v3 = vmul.f32 %v1649_v38, %v485_v46  ;;  %v498_v5 = vmul.f32 %v1651_v39, %v485_v46  ;;  %v545_v6 = vpop.permute.xlu1 %544 }
  0xc5   : > { %v1771_v41 = vpop.permute.xlu2 %736 }
  0xc6   : > { %v503_v8 = vadd.f32 %v497_v3, %v473_v0  ;;  %v504_v9 = vadd.f32 %v498_v5, %v474_v1 }
  0xc8   : > { %v527_v13 = vmul.f32 %v521_v56, %v503_v8  ;;  %v528_v14 = vmul.f32 %v521_v56, %v504_v9 }
  0xc9   : > { %v1739_v23 = vld [vmem:[#allocation2 + $0x8] sm:$0xff] }
  0xca   : > { %v551_v17 = vadd.f32 %v545_v6, %v527_v13  ;;  %v552_v18 = vadd.f32 %v545_v6, %v528_v14  ;;  %715 = vrot.lane.b32.xlu1 %v1737_v16, %s1428_s12  ;;  %711 = vrot.lane.b32.xlu2 %v1739_v23, %s1428_s12  ;;  %v668_v49 = vmul.f32 %v1670_v2, %v1739_v23  ;;  %v1438_v14 = vmov 8  }
  0xcb   : > { %v777_v0 = vpop.permute.xlu0 %776 }
  0xcc   : > { %v557_v38 = vmax.f32 %v551_v17, 0.0  ;;  %v558_v39 = vmax.f32 %v552_v18, 0.0  ;;  %v636_v26 = vpop.permute.xlu1 %635 }
  0xcd   : > { %v1748_v28 = vmul.f32 %v636_v26, %v623_v27 }
  0xce   : > { %v563_v29 = vmin.f32 %v557_v38, 6.0  ;;  %v564_v30 = vmin.f32 %v558_v39, 6.0  ;;  %v1779_v45 = vpop.permute.xlu2 %772 }
  0xd0   : > { %v1752_v21 = vsel %vm1673_vm4, 0.0, %v563_v29  ;;  %v595_v33 = vsel %vm1677_vm5, 0.0, %v564_v30 }
  0xd1   : > { %v624_v34 = vsel %vm1717_vm7, %v1752_v21, 0.0  ;;  %602 = vst.msk [vmem:[#allocation2 + $0x28] sm:$0xff] %vm597_vm6, %v595_v33  ;;  %v671_v53 = vmul.f32 %v665_v12, %v1752_v21 }
  0xd2   : > { %749 = vrot.lane.b32.xlu1 %v1723_v35, %s1429_s21  ;;  %v1761_v37 = vmul.f32 %v641_v25, %v624_v34  ;;  %717 = vrot.lane.b32.xlu2 %v1752_v21, %s1428_s12 }
  0xd5   : > { %v661_v42 = vpop.permute.xlu1 %660 }
  0xd6   : > { %v669_v43 = vmul.f32 %v661_v42, %v1689_v24  ;;  %v670_v50 = vmul.f32 %v661_v42, %v1737_v16 }
  0xd7   : > { %v799_v54 = vpop.permute.xlu2 %798 }
  0xd8   : > { %v1765_v40 = vld [vmem:[#allocation2 + $0x28] sm:$0xff]  ;;  %v805_v59 = vmul.f32 %v799_v54, %v1752_v21 }
  0xd9   : > { %719 = vrot.lane.b32.xlu0 %v1765_v40, %s1428_s12  ;;  %v672_v52 = vmul.f32 %v665_v12, %v1765_v40  ;;  %v806_v60 = vmul.f32 %v799_v54, %v1765_v40 }
  0xda   : > { %753 = vrot.lane.b32.xlu1 %v1689_v24, %s1429_s21  ;;  %751 = vrot.lane.b32.xlu2 %v1739_v23, %s1429_s21 }
  0xde   : > { %v1790_v56 = vpop.permute.xlu1 %732 }
  0xdf   : > { %v791_v2 = vpop.permute.xlu2 %790 }
  0xe0   : > { %v801_v55 = vmul.f32 %v791_v2, %v1723_v35  ;;  %v802_v22 = vmul.f32 %v791_v2, %v1739_v23 }
  0xe1   : > { %757 = vrot.lane.b32.xlu0 %v1752_v21, %s1429_s21 }
  0xe2   : > { %759 = vrot.lane.b32.xlu1 %v1765_v40, %s1429_s21  ;;  %755 = vrot.lane.b32.xlu2 %v1737_v16, %s1429_s21 }
  0xe7   : > { %v1799_v61 = vpop.permute.xlu1 %780 }
  0xe9   : > { %683 = vrot.lane.b32.xlu0 %v669_v43, %s1431_s22 }
  0xea   : > { %679 = vrot.lane.b32.xlu1 %v667_v44, %s1431_s22  ;;  %681 = vrot.lane.b32.xlu2 %v668_v49, %s1431_s22 }
  0xf0   : > { %v795_v31 = vpop.permute.xlu1 %794 }
  0xf1   : > { %689 = vrot.lane.b32.xlu0 %v672_v52, %s1431_s22  ;;  %v804_v19 = vmul.f32 %v795_v31, %v1737_v16  ;;  %v803_v32 = vmul.f32 %v795_v31, %v1689_v24 }
  0xf2   : > { %685 = vrot.lane.b32.xlu1 %v670_v50, %s1431_s22  ;;  %687 = vrot.lane.b32.xlu2 %v671_v53, %s1431_s22 }
  0xf9   : > { %924 = vperm.xlu0 %1316, %v1597_v11  }
  0xfa   : > { %920 = vperm.xlu1 %1317, %v1616_v15   ;;  %916 = vperm.xlu2 %1318, %v1583_v7  }
 0x101   : > { %845 = vrot.lane.b32.xlu0 %v1765_v40, %s1432_s23 }
 0x102   : > { %813 = vrot.lane.b32.xlu1 %v801_v55, %s1433_s25  ;;  %843 = vrot.lane.b32.xlu2 %v1752_v21, %s1432_s23 }
 0x103   : > { %1320 = vset.pattern.permute.xlu0 %v1434_v58  ;;  %1319 = vset.pattern.permute.xlu2 %v1434_v58 }
 0x104   : > { %1321 = vset.pattern.permute.xlu1 %v1435_v62 }
 0x109   : > { %839 = vrot.lane.b32.xlu0 %v1689_v24, %s1432_s23 }
 0x10a   : > { %821 = vrot.lane.b32.xlu1 %v805_v59, %s1433_s25  ;;  %823 = vrot.lane.b32.xlu2 %v806_v60, %s1433_s25 }
 0x111   : > { %883 = vrot.lane.b32.xlu0 %v1752_v21, %s1436_s13 }
 0x112   : > { %841 = vrot.lane.b32.xlu1 %v1737_v16, %s1432_s23  ;;  %866 = vperm.xlu2 %1319, %v1597_v11  }
 0x119   : > { %819 = vrot.lane.b32.xlu0 %v804_v19, %s1433_s25 }
 0x11a   : > { %885 = vrot.lane.b32.xlu1 %v1765_v40, %s1436_s13  ;;  %817 = vrot.lane.b32.xlu2 %v803_v32, %s1433_s25 }
 0x11b   : > { %1325 = vset.pattern.permute.xlu2 %v1424_v4 }
 0x121   : > { %862 = vperm.xlu0 %1320, %v1616_v15  }
 0x122   : > { %835 = vrot.lane.b32.xlu1 %v1723_v35, %s1432_s23  ;;  %837 = vrot.lane.b32.xlu2 %v1739_v23, %s1432_s23 }
 0x124   : > { %v712_v63 = vpop.permute.xlu2 %711  ;;  %v714_v51 = vpop.permute.xlu0 %713 }
 0x129   : > { %858 = vperm.xlu0 %1320, %v1583_v7  }
 0x12a   : > { %879 = vrot.lane.b32.xlu1 %v1689_v24, %s1436_s13  ;;  %881 = vrot.lane.b32.xlu2 %v1737_v16, %s1436_s13 }
 0x12c   : > { %v718_v36 = vpop.permute.xlu2 %717 }
 0x131   : > { %1322 = vset.pattern.permute.xlu0 %v1435_v62 }
 0x132   : > { %906 = vperm.xlu1 %1321, %v1597_v11   ;;  %902 = vperm.xlu0 %1322, %v1616_v15  }
 0x133   : > { %815 = vrot.lane.b32.xlu2 %v802_v22, %s1433_s25 }
 0x134   : > { %v710_v1 = vpop.permute.xlu1 %709  ;;  %v752_v3 = vpop.permute.xlu2 %751 }
 0x135   : > { %v722_v5 = vsel %vm721_vm8, %v710_v1, %v712_v63 }
 0x136   : > { %v728_v6 = vsel %vm1825_vm9, %v722_v5, 0.0 }
 0x137   : > { %v743_v53 = vmul.f32 %v1790_v56, %v728_v6 }
 0x13a   : > { %875 = vrot.lane.b32.xlu1 %v1723_v35, %s1436_s13  ;;  %898 = vperm.xlu0 %1322, %v1583_v7  }
 0x13b   : > { %877 = vrot.lane.b32.xlu2 %v1739_v23, %s1436_s13  ;;  %1324 = vset.pattern.permute.xlu1 %v1424_v4  ;;  %s1202_s13 = sshll.u32 %s1409_s17, 1 }
 0x13c   : > { %v716_v57 = vpop.permute.xlu1 %715  ;;  %v756_v8 = vpop.permute.xlu2 %755 }
 0x13d   : > { %v723_v9 = vsel %vm721_vm8, %v714_v51, %v716_v57 }
 0x13e   : > { %v729_v13 = vsel %vm1825_vm9, %v723_v9, 0.0 }
 0x13f   : > { %v744_v19 = vmul.f32 %v1771_v41, %v729_v13 }
 0x142   : > { %969 = vrot.lane.b32.xlu1 %v1752_v21, %s1437_s18  ;;  %1323 = vset.pattern.permute.xlu0 %v1438_v14 }
 0x143   : > { %971 = vrot.lane.b32.xlu2 %v1765_v40, %s1437_s18  ;;  %992 = vperm.xlu0 %1323, %v1597_v11  }
 0x144   : > { %v750_v17 = vpop.permute.xlu1 %749  ;;  %v682_v18 = vpop.permute.xlu2 %681 }
 0x145   : > { %v762_v25 = vsel %vm761_vm10, %v750_v17, %v752_v3 }
 0x146   : > { %v768_v38 = vsel %vm1717_vm7, %v762_v25, 0.0 }
 0x14b   : > { %v720_v39 = vpop.permute.xlu0 %719  ;;  %988 = vperm.xlu0 %1323, %v1616_v15  }
 0x14c   : > { %v754_v26 = vpop.permute.xlu1 %753  ;;  %v724_v27 = vsel %vm721_vm8, %v718_v36, %v720_v39  ;;  %v688_v29 = vpop.permute.xlu2 %687 }
 0x14d   : > { %v763_v30 = vsel %vm761_vm10, %v754_v26, %v756_v8  ;;  %v730_v33 = vsel %vm1825_vm9, %v724_v27, 0.0 }
 0x14e   : > { %v769_v11 = vsel %vm1717_vm7, %v763_v30, 0.0 }
 0x14f   : > { %v784_v34 = vmul.f32 %v777_v0, %v769_v11 }
 0x153   : > { %v758_v10 = vpop.permute.xlu0 %757  ;;  %984 = vperm.xlu0 %1323, %v1583_v7   ;;  %v783_v7 = vmul.f32 %v1779_v45, %v768_v38 }
 0x154   : > { %v760_v12 = vpop.permute.xlu1 %759  ;;  %v1859_v42 = vpop.permute.xlu2 %916 }
 0x155   : > { %v764_v15 = vsel %vm761_vm10, %v758_v10, %v760_v12  ;;  %v927_v30 = vmul.f32 %v1859_v42, %v1723_v35 }
 0x156   : > { %v770_v43 = vsel %vm1717_vm7, %v764_v15, 0.0 }
 0x15b   : > { %v684_v44 = vpop.permute.xlu0 %683  ;;  %1326 = vset.pattern.permute.xlu0 %v1424_v4  ;;  %v745_v4 = vmul.f32 %v1700_v48, %v730_v33  ;;  %v928_v33 = vmul.f32 %v1859_v42, %v1739_v23  ;;  %v1003_v42 = vld [vmem:[%s2010_s5 + $0x10] sm:$0xff] }
 0x15c   : > { %v680_v49 = vpop.permute.xlu1 %679  ;;  %v844_v50 = vpop.permute.xlu2 %843 }
 0x15d   : > { %v692_v52 = vsel %vm691_vm11, %v680_v49, %v682_v18  ;;  %v1081_v18 = vld [vmem:[%s2014_s9] sm:$0xf] }
 0x15e   : > { %v698_v54 = vadd.f32 %v692_v52, %v1733_v47  ;;  %v785_v47 = vmul.f32 %v1799_v61, %v770_v43 }
 0x160   : > { %v746_v2 = vadd.f32 %v743_v53, %v698_v54 }
 0x162   : > { %v1868_v55 = vadd.f32 %v783_v7, %v746_v2  ;;  %v1023_v2 = vld [vmem:[%s2011_s6 + $0x8] sm:$0xff] }
 0x163   : > { %v690_v58 = vpop.permute.xlu0 %689 }
 0x164   : > { %v686_v59 = vpop.permute.xlu1 %685  ;;  %v694_v60 = vsel %vm691_vm11, %v688_v29, %v690_v58  ;;  %v824_v62 = vpop.permute.xlu2 %823 }
 0x165   : > { %v693_v31 = vsel %vm691_vm11, %v684_v44, %v686_v59  ;;  %v700_v32 = vadd.f32 %v694_v60, %v1761_v37 }
 0x166   : > { %v699_v56 = vadd.f32 %v693_v31, %v1748_v28 }
 0x167   : > { %v748_v63 = vadd.f32 %v745_v4, %v700_v32  ;;  %v1074_v32 = vld [vmem:[%s2013_s8] sm:$0xf] }
 0x168   : > { %v747_v45 = vadd.f32 %v744_v19, %v699_v56  ;;  %v1022_v19 = vld [vmem:[%s2011_s6] sm:$0xff] }
 0x169   : > { %v788_v36 = vadd.f32 %v785_v47, %v748_v63 }
 0x16a   : > { %v787_v22 = vadd.f32 %v784_v34, %v747_v45 }
 0x16b   : > { %v925_v0 = vpop.permute.xlu0 %924 }
 0x16c   : > { %v921_v1 = vpop.permute.xlu1 %920  ;;  %v931_v3 = vmul.f32 %v925_v0, %v1752_v21  ;;  %v932_v5 = vmul.f32 %v925_v0, %v1765_v40  ;;  %v867_v6 = vpop.permute.xlu2 %866  ;;  %v1024_v21 = vld [vmem:[%s2011_s6 + $0x10] sm:$0xff] }
 0x16d   : > { %1037 = vperm.xlu0 %1326, %v1024_v21   ;;  %v929_v8 = vmul.f32 %v921_v1, %v1689_v24  ;;  %v930_v9 = vmul.f32 %v921_v1, %v1737_v16 }
 0x16e   : > { %949 = vrot.lane.b32.xlu2 %v932_v5, %s1439_s28  ;;  %947 = vrot.lane.b32.xlu1 %v931_v3, %s1439_s28 }
 0x173   : > { %v846_v48 = vpop.permute.xlu0 %845 }
 0x174   : > { %v814_v28 = vpop.permute.xlu1 %813  ;;  %v850_v37 = vsel %vm847_vm12, %v844_v50, %v846_v48  ;;  %v818_v41 = vpop.permute.xlu2 %817 }
 0x175   : > { %v856_v61 = vsel %vm1825_vm9, %v850_v37, 0.0  ;;  %1084 = vperm.xlu0 %1326, %v1081_v18  }
 0x176   : > { %v871_v51 = vmul.f32 %v867_v6, %v856_v61  ;;  %967 = vrot.lane.b32.xlu2 %v1737_v16, %s1437_s18  ;;  %965 = vrot.lane.b32.xlu1 %v1689_v24, %s1437_s18 }
 0x17b   : > { %v840_v40 = vpop.permute.xlu0 %839 }
 0x17c   : > { %v822_v57 = vpop.permute.xlu1 %821  ;;  %v838_v13 = vpop.permute.xlu2 %837 }
 0x17d   : > { %v828_v14 = vsel %vm825_vm13, %v822_v57, %v824_v62 }
 0x17e   : > { %v834_v17 = vadd.f32 %v828_v14, %v788_v36  ;;  %945 = vrot.lane.b32.xlu2 %v930_v9, %s1439_s28  ;;  %943 = vrot.lane.b32.xlu1 %v929_v8, %s1439_s28 }
 0x180   : > { %v874_v25 = vadd.f32 %v871_v51, %v834_v17 }
 0x183   : > { %v884_v38 = vpop.permute.xlu0 %883 }
 0x184   : > { %v842_v39 = vpop.permute.xlu1 %841  ;;  %v882_v26 = vpop.permute.xlu2 %881 }
 0x185   : > { %v849_v24 = vsel %vm847_vm12, %v840_v40, %v842_v39 }
 0x186   : > { %v855_v16 = vsel %vm1825_vm9, %v849_v24, 0.0  ;;  %963 = vrot.lane.b32.xlu2 %v1739_v23, %s1437_s18  ;;  %961 = vrot.lane.b32.xlu1 %v1723_v35, %s1437_s18  ;;  %v1002_v23 = vld [vmem:[%s2010_s5 + $0x8] sm:$0xff]  ;;  %s364_s18 = sand.u32 1, %s1397_s14  }
 0x187   : > { %s1196_s29 = sshll.u32 %s364_s18, 2 }
 0x188   : > { %s366_s22 = scalar_lea.vmem [#allocation3], %s1196_s29 }
 0x18b   : > { %v820_v27 = vpop.permute.xlu0 %819 }
 0x18c   : > { %v886_v29 = vpop.permute.xlu1 %885  ;;  %v827_v11 = vsel %vm825_vm13, %v818_v41, %v820_v27 }
 0x18d   : > { %v816_v34 = vpop.permute.xlu2 %815  ;;  %v890_v10 = vsel %vm887_vm14, %v884_v38, %v886_v29  ;;  %v833_v12 = vadd.f32 %v827_v11, %v787_v22 }
 0x18e   : > { %v826_v15 = vsel %vm825_vm13, %v814_v28, %v816_v34  ;;  %v896_v43 = vsel %vm1717_vm7, %v890_v10, 0.0  ;;  %941 = vrot.lane.b32.xlu2 %v928_v33, %s1439_s28  ;;  %939 = vrot.lane.b32.xlu1 %v927_v30, %s1439_s28  ;;  %s1110_s28 = sadd.s32 %s1405_s16, %s1202_s13  ;;  %s1100_s16 = scalar_lea.sflag [#allocation4], %s364_s18 }
 0x18f   : > { %v832_v35 = vadd.f32 %v826_v15, %v1868_v55  ;;  %v1001_v55 = vld [vmem:[%s2010_s5] sm:$0xff]  ;;  %s1203_s1 = sshll.u32 %s1110_s28, 2 }
 0x190   : > { %s1112_s21 = scalar_lea.hbm %s2015_s10, %s1203_s1 }
 0x191   : > { %s1116_s17 = sshll.u32 %s1112_s21, 4  ;;  %s1117_s17 = int_to_ptr.hbm [resolvable:$true] %s1116_s17 }
 0x192   : > { %s1341_s23 = sshra.s32 %s1117_s17, 4  ;;  %s1342_s23 = int_to_ptr.hbm [resolvable:$true] %s1341_s23 }
 0x193   : > { %v863_v44 = vpop.permute.xlu0 %862  ;;  %s1343_s13 = scalar_lea.hbm %s1342_s23, 4  ;;  %p1348_p5 = scmp.lt.s32.totalorder %s1342_s23, %s2015_s10 }
 0x194   : > { %v836_v49 = vpop.permute.xlu1 %835  ;;  %v870_v50 = vmul.f32 %v863_v44, %v855_v16  ;;  %p1344_p1 = scmp.ne.s32.totalorder %s1342_s23, %s1343_s13  ;;  %p1349_p6 = scmp.lt.s32.totalorder %s1347_s30, %s1343_s13 }
 0x195   : > { %v848_v52 = vsel %vm847_vm12, %v836_v49, %v838_v13  ;;  %v878_v22 = vpop.permute.xlu2 %877 }
 0x196   : > { %v854_v53 = vsel %vm1825_vm9, %v848_v52, 0.0  ;;  %v873_v54 = vadd.f32 %v870_v50, %v833_v12  ;;  %1011 = vperm.xlu2 %1325, %v1002_v23   ;;  %1016 = vperm.xlu1 %1324, %v1003_v42   ;;  %p1345_p2 = pnand %p1344_p1, %p1546_p3  ;;  %p1350_p7 = por %p1349_p6, %p1348_p5 }
 0x198   : > { %p1346_p4 = pneg %p1345_p2 }
 0x19a   : > { %p1351_p9 = pnand %p1350_p7, %p1346_p4 }
 0x19b   : > { %v859_v7 = vpop.permute.xlu0 %858 }
 0x19c   : > { %v880_v58 = vpop.permute.xlu1 %879  ;;  %v869_v59 = vmul.f32 %v859_v7, %v854_v53 }
 0x19d   : > { %v889_v60 = vsel %vm887_vm14, %v880_v58, %v882_v26  ;;  %v972_v28 = vpop.permute.xlu2 %971 }
 0x19e   : > { %v895_v62 = vsel %vm1717_vm7, %v889_v60, 0.0  ;;  %v872_v31 = vadd.f32 %v869_v59, %v832_v35  ;;  %1032 = vperm.xlu2 %1325, %v1023_v2   ;;  %1006 = vperm.xlu1 %1324, %v1001_v55   ;;  %v1090_v35 = vld.sshfl [vmem:[#allocation1 + $0x8] sm:$0xff pattern:$0x75316420] }
 0x1a4   : > { %v907_v4 = vpop.permute.xlu1 %906  ;;  %v903_v56 = vpop.permute.xlu0 %902 }
 0x1a5   : > { %v911_v47 = vmul.f32 %v907_v4, %v896_v43  ;;  %v910_v63 = vmul.f32 %v903_v56, %v895_v62  ;;  %v1089_v43 = vld.sshfl [vmem:[#allocation1] sm:$0xff pattern:$0x75316420] }
 0x1a6   : > { %1027 = vperm.xlu1 %1324, %v1022_v19   ;;  %1077 = vperm.xlu2 %1325, %v1074_v32  }
 0x1a7   : > { %v914_v45 = vadd.f32 %v911_v47, %v874_v25  ;;  %v913_v36 = vadd.f32 %v910_v63, %v873_v54  ;;  %v1049_v47 = vld [vmem:[%s2012_s7] sm:$0xf] }
 0x1ac   : > { %v876_v0 = vpop.permute.xlu1 %875  ;;  %v899_v3 = vpop.permute.xlu0 %898 }
 0x1ad   : > { %v888_v1 = vsel %vm887_vm14, %v876_v0, %v878_v22 }
 0x1ae   : > { %v894_v5 = vsel %vm1717_vm7, %v888_v1, 0.0  ;;  %1091 = vrot.lane.b32.xlu1 %v1089_v43, %s1433_s25  ;;  %1093 = vrot.lane.b32.xlu2 %v1090_v35, %s1433_s25  ;;  %s1114_s25 = sshll.u32 %s366_s22, 4  ;;  %s1115_s25 = int_to_ptr.vmem [resolvable:$true] %s1114_s25 }
 0x1af   : > { %v909_v6 = vmul.f32 %v899_v3, %v894_v5 }
 0x1b1   : > { %v912_v48 = vadd.f32 %v909_v6, %v872_v31 }
 0x1b4   : > { %v970_v61 = vpop.permute.xlu1 %969 }
 0x1b5   : > { %v976_v51 = vsel %vm973_vm15, %v970_v61, %v972_v28  ;;  %v993_v40 = vpop.permute.xlu0 %992 }
 0x1b6   : > { %v982_v57 = vsel %vm1825_vm9, %v976_v51, 0.0 }
 0x1b7   : > { %v997_v20 = vmul.f32 %v993_v40, %v982_v57 }
 0x1bd   : > { %v989_v38 = vpop.permute.xlu0 %988 }
 0x1c5   : > { %v985_v10 = vpop.permute.xlu0 %984 }
 0x1c8   : > { %v950_v37 = vpop.permute.xlu2 %949 }
 0x1d0   : > { %v968_v41 = vpop.permute.xlu2 %967 }
 0x1d8   : > { %v946_v21 = vpop.permute.xlu2 %945 }
 0x1df   : > { %v1038_v54 = vpop.permute.xlu0 %1037 }
 0x1e0   : > { %v948_v8 = vpop.permute.xlu1 %947  ;;  %v964_v17 = vpop.permute.xlu2 %963 }
 0x1e1   : > { %v954_v9 = vsel %vm951_vm0, %v948_v8, %v950_v37 }
 0x1e2   : > { %v960_v13 = vadd.f32 %v954_v9, %v914_v45 }
 0x1e4   : > { %v1000_v14 = vadd.f32 %v997_v20, %v960_v13 }
 0x1e7   : > { %v1085_v1 = vpop.permute.xlu0 %1084 }
 0x1e8   : > { %v966_v18 = vpop.permute.xlu1 %965  ;;  %v942_v16 = vpop.permute.xlu2 %941 }
 0x1e9   : > { %v975_v25 = vsel %vm973_vm15, %v966_v18, %v968_v41 }
 0x1ea   : > { %v981_v39 = vsel %vm1825_vm9, %v975_v25, 0.0 }
 0x1eb   : > { %v996_v27 = vmul.f32 %v989_v38, %v981_v39 }
 0x1f0   : > { %v944_v26 = vpop.permute.xlu1 %943  ;;  %v1012_v11 = vpop.permute.xlu2 %1011 }
 0x1f1   : > { %v953_v24 = vsel %vm951_vm0, %v944_v26, %v946_v21 }
 0x1f2   : > { %v959_v29 = vadd.f32 %v953_v24, %v913_v36 }
 0x1f4   : > { %v999_v30 = vadd.f32 %v996_v27, %v959_v29 }
 0x1f6   : > { %v1020_v50 = vmul.f32 %v1012_v11, %v999_v30 }
 0x1f8   : > { %v962_v33 = vpop.permute.xlu1 %961  ;;  %v1033_v52 = vpop.permute.xlu2 %1032 }
 0x1f9   : > { %v974_v34 = vsel %vm973_vm15, %v962_v33, %v964_v17  ;;  %v1041_v7 = vadd.f32 %v1033_v52, %v1020_v50 }
 0x1fa   : > { %v980_v12 = vsel %vm1825_vm9, %v974_v34, 0.0 }
 0x1fb   : > { %v995_v23 = vmul.f32 %v985_v10, %v980_v12  ;;  %v1044_v55 = vmax.f32 %v1041_v7, 0.0 }
 0x1fd   : > { %v1047_v62 = vmin.f32 %v1044_v55, 6.0 }
 0x200   : > { %v940_v15 = vpop.permute.xlu1 %939  ;;  %v1078_v63 = vpop.permute.xlu2 %1077 }
 0x201   : > { %v952_v44 = vsel %vm951_vm0, %v940_v15, %v942_v16 }
 0x202   : > { %v958_v42 = vadd.f32 %v952_v44, %v912_v48 }
 0x204   : > { %v998_v49 = vadd.f32 %v995_v23, %v958_v42 }
 0x208   : > { %v1017_v53 = vpop.permute.xlu1 %1016  ;;  %v1094_v45 = vpop.permute.xlu2 %1093 }
 0x209   : > { %v1021_v2 = vmul.f32 %v1017_v53, %v1000_v14 }
 0x20b   : > { %v1042_v46 = vadd.f32 %v1038_v54, %v1021_v2 }
 0x20d   : > { %v1045_v58 = vmax.f32 %v1042_v46, 0.0 }
 0x20f   : > { %v1048_v59 = vmin.f32 %v1045_v58, 6.0 }
 0x210   : > { %v1007_v60 = vpop.permute.xlu1 %1006 }
 0x211   : > { %1067 = vmatpush.msra.mxu0 %v1048_v59  ;;  %v1019_v31 = vmul.f32 %v1007_v60, %v998_v49 }
 0x213   : > { %1068 = vmatpush.msra.mxu0 %v1047_v62 }
 0x218   : > { %v1028_v19 = vpop.permute.xlu1 %1027 }
 0x219   : > { %v1040_v4 = vadd.f32 %v1028_v19, %v1019_v31 }
 0x21b   : > { %v1043_v32 = vmax.f32 %v1040_v4, 0.0 }
 0x21d   : > { %v1046_v56 = vmin.f32 %v1043_v32, 6.0 }
 0x21f   : > { %1069 = vmatpush.msra.mxu0 %v1046_v56 }
 0x220   : > { %1200 = vmatmul.msk.f32.vlgmr.msra.gmra.mxu0 %vm1050_vm1, %v1049_v47  ;;  %v1092_v36 = vpop.permute.xlu1 %1091 }
 0x221   : > { %v1095_v3 = vsel %vm825_vm13, %v1092_v36, %v1094_v45 }
 0x29d   : > { %v1071_v22 = vpop.f32.mrf.mxu0 }
 0x29e   : > { %v1080_v0 = vmul.f32 %v1078_v63, %v1071_v22 }
 0x2a0   : > { %v1087_v5 = vadd.f32 %v1085_v1, %v1080_v0 }
 0x2a2   : > { %v1097_v6 = vadd.f32 %v1095_v3, %v1087_v5 }
 0x2a4   : > { %1098 = vst [vmem:[%s366_s22] sm:$0xf] %v1097_v6 }
 0x2a5   : > { %1354 = shalt.err (!%p1351_p9)
}
 0x2a6   : > { %1207 = dma.vmem_to_hbm [thread:$0]  (%p1546_p3), %s1115_s25, 64, %s1117_s17, %s1100_s16  }
 0x2a7 PF: > { %s2034_s18 = sld [smem:[#allocation6_spill]]  ;;  %p1213_p10 = scmp.ge.s32.totalorder %s1421_s20, 2 }
 0x2a9   : > { %p1210_p11 = pnand %p1213_p10, %p1555_p8 }
 0x2ab   : > { %p1211_p12 = pneg %p1210_p11 }
 0x2ad   : > { %s1128_s21 = sand.u32 1, %s2034_s18  }
 0x2ae   : > { %s1129_s22 = scalar_lea.sflag [#allocation4], %s1128_s21 }
 0x2af   : > { %1388 = dma.done.wait (%p1211_p12), %s1129_s22, 64  }
 0x2b0   : > { %1390 = vsyncadd (%p1211_p12), %s1129_s22, 4294967232  ;;  %s23_s20 = sadd.s32 1, %s1421_s20   ;;  %s2035_s16 = sld [smem:[#allocation7_spill]] }
 0x2b1   : > { %p20_p13 = scmp.ge.s32.totalorder %s23_s20, 6   ;;  %s2036_s18 = sld [smem:[#allocation8_spill]] }
 0x2b2   : > { %s2037_s13 = smov %s1397_s14  ;;  %s2038_s14 = smov %s1401_s15 }
 0x2b3   : > { %s2039_s15 = smov %s1564_s11  ;;  %s2040_s17 = smov %s1417_s19 }
 0x2b4   : > { %s2041_s19 = smov %s2047_s24  ;;  %22 = sbr.rel (!%p20_p13) target bundleno = 7 (0x7), region = 96 }
 0x2b9   :  { %1135 = vsyncpa [#allocation4], 1 }
 0x2ba   :  { %1137 = vsyncpa [#allocation4 + $0x1], 1 }

</bundles_post_ra>
